<compile_context>
chip_gen: v7x
topology: tpu7x:2x2x1
jax: 0.10.0
libtpu: 0.0.40
codegen_flags: <defaults>
</compile_context>

<pallas_src>
import jax
import jax.numpy as jnp
from jax import lax
from jax.experimental import pallas as pl
from jax.experimental.pallas import tpu as pltpu

_MiB = 1024 * 1024
MIN_GRID_STEPS = 8  # >= 4 pipelined steps per TensorCore on v7x (2 TCs/chip)


def _make_kernel(nt, hw):
    inv_hw = 1.0 / float(hw)

    def kernel(x_ref, w1_ref, w2t_ref, o_ref):
        # x_ref/o_ref: (nt, C, HW) in the input's native dtype.
        # w1_ref:  (C_r, C) f32   (Conv2d(C, C//r, 1) weight, squeezed)
        # w2t_ref: (C_r, C) f32   (Conv2d(C//r, C, 1) weight, transposed)
        xv = x_ref[...]

        # ---- global pooling (lane reductions) ------------------------------
        # f32-accumulated sum (no full-tile f32 copy for bf16 inputs); the
        # compiler masks the non-128-aligned tail of the HW axis.
        avg = jnp.sum(xv, axis=-1, dtype=jnp.float32) * inv_hw      # (nt, C)
        mx = jnp.max(xv, axis=-1).astype(jnp.float32)               # (nt, C)

        # ---- shared 2-layer MLP (the two 1x1 convs), fused over avg & max --
        p = jnp.concatenate([avg, mx], axis=0)                      # (2nt, C)
        h = lax.dot_general(p, w1_ref[...], (((1,), (1,)), ((), ())),
                            preferred_element_type=jnp.float32)     # (2nt, C_r)
        h = jnp.maximum(h, 0.0)                                     # ReLU
        g = jnp.dot(h, w2t_ref[...],
                    preferred_element_type=jnp.float32)             # (2nt, C)
        gate = jax.nn.sigmoid(g[:nt] + g[nt:])                      # (nt, C)

        # ---- apply the channel gate in the tile's native dtype --------------
        # (intentional: for bf16 inputs the gate multiply stays bf16, matching
        #  a bf16 nn-module; pooling/MLP math above is f32)
        o_ref[...] = xv * gate[:, :, None].astype(xv.dtype)

    return kernel


def channel_attention(x, w1, w2):
    """CBAM channel attention.  x: (N, C, H, W); w1: (C//r, C); w2: (C, C//r)."""
    N, C, H, W = x.shape
    HW = H * W
    itemsize = jnp.dtype(x.dtype).itemsize
    per_image_bytes = C * HW * itemsize

    # ---- generation-aware VMEM / block budgets ------------------------------
    try:
        vmem_cap = int(pltpu.get_tpu_info().vmem_capacity_bytes)
    except Exception:
        vmem_cap = 64 * _MiB  # conservative (v7x-sized) fallback
    usable_vmem = min(48 * _MiB, int(0.75 * vmem_cap))
    # v7x (64 MiB VMEM, ~3.2 TB/s HBM) wants larger blocks to amortize the
    # ~0.35us per-step cost; v5e/v6e (128 MiB VMEM, lower HBM BW) are fine at
    # ~2 MiB and v5e's scoped default is only 16 MiB (explicit limit below).
    target_block_bytes = 4 * _MiB if vmem_cap <= 96 * _MiB else 2 * _MiB

    if 4 * per_image_bytes + 4 * _MiB > usable_vmem:
        # TODO(synk): spatial-tiled two-pass path (HW-tiled "arbitrary" reduce
        # accumulating sum/max, then an apply pass) for per-image planes that
        # exceed VMEM; matters first on v7x's 64 MiB with huge C*H*W.
        raise NotImplementedError(
            "per-image (C, H*W) plane exceeds the VMEM budget; needs the "
            "spatial-tiling path")

    # ---- batch-tile size -----------------------------------------------------
    # Guarantee >= MIN_GRID_STEPS grid steps first (so the software pipeline
    # actually overlaps DMA-in / compute / DMA-out on every generation), then
    # grow blocks toward target_block_bytes.  cdiv gridding: nt need not
    # divide N; the last block may be partial (OOB rows are discarded).
    nt_bytes = max(1, target_block_bytes // per_image_bytes)
    nt_grid = max(1, N // MIN_GRID_STEPS)
    nt = int(max(1, min(N, nt_bytes, nt_grid)))
    grid_n = pl.cdiv(N, nt)

    block_bytes = nt * per_image_bytes
    weight_bytes = 4 * (w1.size + w2.size)
    # 2x double-buffered input blocks + 2x output blocks + weights + f32 temps.
    vmem_estimate = 4 * block_bytes + 2 * weight_bytes + 2 * _MiB
    vmem_limit = int(min(max(vmem_estimate, 16 * _MiB), usable_vmem))

    # NCHW kept to match the PyTorch module; HW stays at its true size (no pad).
    # TODO(synk): an NHWC layout (C on the lane axis, 128-aligned for real CNN
    # tails) would avoid masked stores entirely — layout change left to caller.
    x_flat = x.reshape(N, C, HW)
    w1f = w1.astype(jnp.float32)       # (C_r, C)  — C on the lane axis
    w2t = w2.T.astype(jnp.float32)     # (C_r, C)  — C on the lane axis

    kernel = _make_kernel(nt, HW)

    out_flat = pl.pallas_call(
        kernel,
        out_shape=jax.ShapeDtypeStruct((N, C, HW), x.dtype),
        grid_spec=pltpu.PrefetchScalarGridSpec(
            num_scalar_prefetch=0,
            grid=(grid_n,),
            in_specs=[
                # Last two block dims equal the full (C, HW) array extents,
                # which the (8,128) rule permits; non-128 HW only costs
                # masked vst.msk stores (far cheaper than extra HBM passes).
                # TODO(synk): add pipeline_mode=pl.Buffered(3) here if xprof
                # shows exposed input DMA on v5e/v6e (free VMEM-wise there).
                pl.BlockSpec((nt, C, HW), lambda b: (b, 0, 0)),
                # Tiny, grid-invariant weights: constant index_map -> the
                # block is revisited every step, not re-DMA'd.
                pl.BlockSpec(w1f.shape, lambda b: (0, 0)),
                pl.BlockSpec(w2t.shape, lambda b: (0, 0)),
            ],
            out_specs=pl.BlockSpec((nt, C, HW), lambda b: (b, 0, 0)),
        ),
        compiler_params=pltpu.CompilerParams(
            dimension_semantics=("parallel",),
            vmem_limit_bytes=vmem_limit),
    )(x_flat, w1f, w2t)

    return out_flat.reshape(N, C, H, W)


def reference(x, w1, w2):
    # Pure-JAX reference mirroring the PyTorch ChannelAttention.forward.
    avg = jnp.mean(x, axis=(2, 3))                    # AdaptiveAvgPool2d(1)
    mx = jnp.max(x, axis=(2, 3))                      # AdaptiveMaxPool2d(1)

    def fc(p):                                        # 1x1 convs == channel matmuls
        h = jnp.maximum(p @ w1.T, 0.0)                # (N, C_r)
        return h @ w2.T                               # (N, C)

    gate = jax.nn.sigmoid(fc(avg) + fc(mx))
    return x * gate[:, :, None, None]


def _check(out, ref, name):
    # DEFAULT-precision MXU matmuls (single bf16 pass for f32 operands) plus
    # differing reduction orders between kernel and XLA reference make ulp-level
    # tolerances flaky; rtol=1e-3 comfortably bounds the resulting gate error.
    assert out.shape == ref.shape, name
    assert jnp.allclose(out, ref, atol=1e-4, rtol=1e-3), f"{name} mismatch vs reference"


if __name__ == "__main__":
    key = jax.random.PRNGKey(0)
    k1, k2, k3, k4, k5 = jax.random.split(key, 5)

    reduction = 16
    C = 32
    C_r = C // reduction
    # Conv2d(C, C//r, 1, bias=False) / Conv2d(C//r, C, 1, bias=False) weights,
    # squeezed to 2-D.
    w1 = jax.random.normal(k2, (C_r, C), dtype=jnp.float32) * 0.1
    w2 = jax.random.normal(k3, (C, C_r), dtype=jnp.float32) * 0.1

    # Case 1: lane-aligned spatial (16*16 = 256), grid of 8 steps.
    x1 = jax.random.normal(k1, (8, C, 16, 16), dtype=jnp.float32)
    out1 = channel_attention(x1, w1, w2)
    jax.block_until_ready(out1)
    _check(out1, reference(x1, w1, w2), "case 1")

    # Case 2: realistic CNN-tail spatial (7*7 = 49, not a multiple of 128) —
    # no wrapper pad/slice; masked stores inside the kernel.
    x2 = jax.random.normal(k4, (4, C, 7, 7), dtype=jnp.float32)
    out2 = channel_attention(x2, w1, w2)
    jax.block_until_ready(out2)
    _check(out2, reference(x2, w1, w2), "case 2")

    # Case 3: awkward batch (17 -> nt=2, cdiv grid of 9 with a partial block).
    x3 = jax.random.normal(k5, (17, C, 7, 7), dtype=jnp.float32)
    out3 = channel_attention(x3, w1, w2)
    jax.block_until_ready(out3)
    _check(out3, reference(x3, w1, w2), "case 3")

    print("KERNEL_OK")
</pallas_src>

<mosaic_0001>
module attributes {stable_mosaic.version = 11 : i64} {
  func.func @kernel(%arg0: i32, %arg1: memref<1x32x256xf32, #tpu.memory_space<vmem>>, %arg2: memref<2x32xf32, #tpu.memory_space<vmem>>, %arg3: memref<2x32xf32, #tpu.memory_space<vmem>>, %arg4: memref<1x32x256xf32, #tpu.memory_space<vmem>>) attributes {dimension_semantics = [#tpu.dimension_semantics<parallel>], iteration_bounds = array<i64: 8>, scalar_prefetch = 0 : i64, scratch_operands = 0 : i64, tpu.core_type = #tpu.core_type<tc>, window_params = [{transform_indices = @transform_0, window_bounds = array<i64: 1, 32, 256>}, {pipeline_mode = #tpu.pipeline_mode<synchronous>, transform_indices = @transform_1, window_bounds = array<i64: 2, 32>}, {pipeline_mode = #tpu.pipeline_mode<synchronous>, transform_indices = @transform_2, window_bounds = array<i64: 2, 32>}, {transform_indices = @transform_3, window_bounds = array<i64: 1, 32, 256>}]} {
    %c0 = arith.constant 0 : index
    %c0_0 = arith.constant 0 : index
    %c0_1 = arith.constant 0 : index
    %0 = vector.load %arg1[%c0, %c0_0, %c0_1] : memref<1x32x256xf32, #tpu.memory_space<vmem>>, vector<1x32x256xf32>
    %cst = arith.constant dense<0.000000e+00> : vector<1x32xf32>
    %1 = vector.multi_reduction <add>, %0, %cst [2] : vector<1x32x256xf32> to vector<1x32xf32>
    %cst_2 = arith.constant 3.906250e-03 : f32
    %2 = vector.broadcast %cst_2 : f32 to vector<1x32xf32>
    %3 = arith.mulf %1, %2 : vector<1x32xf32>
    %cst_3 = arith.constant dense<0xFF800000> : vector<1x32xf32>
    %4 = vector.multi_reduction <maximumf>, %0, %cst_3 [2] : vector<1x32x256xf32> to vector<1x32xf32>
    %5 = tpu.concatenate %3, %4 in 0 : vector<1x32xf32>, vector<1x32xf32> -> vector<2x32xf32>
    %c0_4 = arith.constant 0 : index
    %c0_5 = arith.constant 0 : index
    %6 = vector.load %arg2[%c0_4, %c0_5] : memref<2x32xf32, #tpu.memory_space<vmem>>, vector<2x32xf32>
    %cst_6 = arith.constant dense<0.000000e+00> : vector<2x2xf32>
    %7 = tpu.matmul %5, %6, %cst_6 {dimension_numbers = #tpu.dot_dimension_numbers<[1], [1], [0], [0], [0, 0, 1, 0], [], []>} : vector<2x32xf32>, vector<2x32xf32>, vector<2x2xf32> -> vector<2x2xf32>
    %cst_7 = arith.constant 0.000000e+00 : f32
    %8 = vector.broadcast %cst_7 : f32 to vector<2x2xf32>
    %9 = arith.maximumf %7, %8 : vector<2x2xf32>
    %c0_8 = arith.constant 0 : index
    %c0_9 = arith.constant 0 : index
    %10 = vector.load %arg3[%c0_8, %c0_9] : memref<2x32xf32, #tpu.memory_space<vmem>>, vector<2x32xf32>
    %cst_10 = arith.constant dense<0.000000e+00> : vector<2x32xf32>
    %11 = tpu.matmul %9, %10, %cst_10 {dimension_numbers = #tpu.dot_dimension_numbers<[1], [0], [0], [1], [0, 0, 1, 1], [], []>} : vector<2x2xf32>, vector<2x32xf32>, vector<2x32xf32> -> vector<2x32xf32>
    %12 = vector.extract_strided_slice %11 {offsets = [0, 0], sizes = [1, 32], strides = [1, 1]} : vector<2x32xf32> to vector<1x32xf32>
    %13 = vector.extract_strided_slice %11 {offsets = [1, 0], sizes = [1, 32], strides = [1, 1]} : vector<2x32xf32> to vector<1x32xf32>
    %14 = arith.addf %12, %13 : vector<1x32xf32>
    %15 = arith.negf %14 : vector<1x32xf32>
    %16 = math.exp %15 : vector<1x32xf32>
    %cst_11 = arith.constant 1.000000e+00 : f32
    %17 = vector.broadcast %cst_11 : f32 to vector<1x32xf32>
    %18 = arith.addf %17, %16 : vector<1x32xf32>
    %19 = arith.divf %17, %18 : vector<1x32xf32>
    %20 = vector.shape_cast %19 : vector<1x32xf32> to vector<1x32x1xf32>
    %21 = vector.broadcast %20 : vector<1x32x1xf32> to vector<1x32x256xf32>
    %22 = arith.mulf %0, %21 : vector<1x32x256xf32>
    %c0_12 = arith.constant 0 : index
    %c0_13 = arith.constant 0 : index
    %c0_14 = arith.constant 0 : index
    %23 = vector.load %arg4[%c0_12, %c0_13, %c0_14] : memref<1x32x256xf32, #tpu.memory_space<vmem>>, vector<1x32x256xf32>
    tpu.vector_store %arg4[%c0_12, %c0_13, %c0_14], %22 {strides = array<i32>} : memref<1x32x256xf32, #tpu.memory_space<vmem>>, vector<1x32x256xf32>,
    return
  }
  func.func @transform_0(%arg0: i32) -> (i32, i32, i32) {
    %c0_i32 = arith.constant 0 : i32
    %c0_i32_0 = arith.constant 0 : i32
    %c0_i32_1 = arith.constant 0 : i32
    return %arg0, %c0_i32, %c0_i32_0 : i32, i32, i32
  }
  func.func @transform_1(%arg0: i32) -> (i32, i32) {
    %c0_i32 = arith.constant 0 : i32
    %c0_i32_0 = arith.constant 0 : i32
    %c0_i32_1 = arith.constant 0 : i32
    return %c0_i32, %c0_i32_0 : i32, i32
  }
  func.func @transform_2(%arg0: i32) -> (i32, i32) {
    %c0_i32 = arith.constant 0 : i32
    %c0_i32_0 = arith.constant 0 : i32
    %c0_i32_1 = arith.constant 0 : i32
    return %c0_i32, %c0_i32_0 : i32, i32
  }
  func.func @transform_3(%arg0: i32) -> (i32, i32, i32) {
    %c0_i32 = arith.constant 0 : i32
    %c0_i32_0 = arith.constant 0 : i32
    %c0_i32_1 = arith.constant 0 : i32
    return %arg0, %c0_i32, %c0_i32_0 : i32, i32, i32
  }
}

</mosaic_0001>

<bundles_post_ra>
// kernel: tpu_custom_call.1
= control target key start
LH: loop header
LB: loop body
LE: loop exit
PB: predicated region body
PF: predicated region fallthrough
CT: control target
= control target key end

     0   :  { %8 = vsyncpa [#allocation3], 0  ;;  %s1004_s0 = inlined_call_operand.hbm [shape: f32[8,32,256], index: 0, kind: input, shape index: {}]   ;;  %s1005_s1 = inlined_call_operand.vmem [shape: f32[2,32], index: 1, kind: input, shape index: {}]   ;;  %s1006_s2 = inlined_call_operand.vmem [shape: f32[2,32], index: 2, kind: input, shape index: {}]   ;;  %s1007_s3 = inlined_call_operand.hbm [shape: f32[8,32,256], index: 3, kind: output, shape index: {}]  }
   0x1   :  { %10 = vsyncpa [#allocation3 + $0x1], 0 }
   0x2   :  { %11 = vsyncpa [#allocation4], 0 }
   0x3   :  { %13 = vsyncpa [#allocation4 + $0x1], 0  ;;  %s790_s12 = smov 0   ;;  %s792_s13 = smov 0  }
   0x4   :  { %s794_s14 = smov 0   ;;  %s796_s15 = smov 0  }
   0x5 LB: > { %s811_s16 = sadd.s32 4294967295, %s760_s15   ;;  %s573_s17 = sadd.s32 4294967294, %s760_s15   ;;  %s760_s15 = sphi %s796_s15, %s1019_s15   ;;  %s756_s14 = sphi %s794_s14, %s1018_s14   ;;  %s752_s13 = sphi %s792_s13, %s1017_s13   ;;  %s748_s12 = sphi %s790_s12, %s1016_s12  }
   0x6   : > { %s815_s18 = sadd.s32 1, %s760_s15   ;;  %s26_s19 = sadd.s32 1, %s756_s14 }
   0x7   : > { %s23_s20 = ssub.s32 %s760_s15, %s815_s18  ;;  %p33_p0 = scmp.ne.s32.totalorder %s756_s14, %s752_s13 }
   0x8   : > { %p24_p1 = scmp.eq.s32.totalorder %s23_s20, 0  ;;  %p34_p2 = scmp.eq.s32.totalorder %s760_s15, 0 }
   0x9   : > { %p39_p3 = scmp.ne.s32.totalorder %s752_s13, %s748_s12  ;;  %p40_p4 = scmp.eq.s32.totalorder %s811_s16, 0 }
   0xa   : > { %s827_s21 = scalar_select %p24_p1, %s756_s14, %s26_s19  }
   0xb   : > { %p829_p5 = por %p34_p2, %p33_p0  ;;  %p833_p6 = por %p40_p4, %p39_p3 }
   0xc   : > { %p105_p7 = scmp.eq.s32.totalorder %s811_s16, 7  ;;  %p111_p8 = scmp.eq.s32.totalorder %s573_s17, 7 }
   0xd   : > { %p620_p9 = scmp.lt.s32.totalorder %s760_s15, 8  ;;  %s137_s26 = sand.u32 1, %s756_s14  }
   0xe   : > { %p839_p10 = por %p105_p7, %p33_p0  ;;  %p843_p11 = por %p111_p8, %p39_p3 }
   0xf   : > { %s592_s27 = sshll.u32 %s760_s15, 10  ;;  %s576_s28 = sshll.u32 %s137_s26, 6 }
  0x10   : > { %s1011_s24 = scalar_select %p839_p10, 1, 0 }
  0x11   : > { %s1012_s25 = scalar_select %p843_p11, 1, 0 }
  0x12   : > { %s852_s4 = scalar_lea.hbm %s1004_s0, %s592_s27  ;;  %s141_s5 = scalar_lea.vmem [#allocation2], %s576_s28 }
  0x13   : > { %s148_s6 = sshll.u32 %s141_s5, 4  ;;  %p856_p12 = pnand %p620_p9, %p829_p5  ;;  %s860_s6 = int_to_ptr.vmem [resolvable:$true] %s148_s6 }
  0x14   : > { %s862_s8 = scalar_lea.sflag [#allocation3], %s137_s26  ;;  %s664_s9 = scalar_lea.hbm %s852_s4, 1024 }
  0x15   : > { %p665_p13 = scmp.ne.s32.totalorder %s852_s4, %s664_s9  ;;  %p666_p0 = pneg %p856_p12 }
  0x16   : > { %s669_s17 = scalar_lea.hbm %s1004_s0, 8192  ;;  %p670_p3 = scmp.lt.u32.totalorder %s852_s4, %s1004_s0 }
  0x17   : > { %p667_p1 = pnand %p666_p0, %p665_p13  ;;  %p671_p4 = scmp.lt.u32.totalorder %s669_s17, %s664_s9 }
  0x18   : > { %p673_p7 = scmp.lt.u32.totalorder %s664_s9, %s852_s4 }
  0x19   : > { %p668_p2 = pneg %p667_p1  ;;  %p672_p5 = por %p671_p4, %p670_p3 }
  0x1b   : > { %p674_p8 = por %p673_p7, %p672_p5 }
  0x1d   : > { %p675_p9 = pnand %p674_p8, %p668_p2 }
  0x1f   : > { %678 = shalt.err (!%p675_p9)
}
  0x20   : > { %s679_s22 = scalar_lea.vmem %s860_s6, 1024  ;;  %s762_s26 = smov [#allocation2]  }
  0x21   : > { %p680_p13 = scmp.ne.s32.totalorder %s860_s6, %s679_s22  ;;  %s684_s27 = sshll.u32 %s762_s26, 4  ;;  %s685_s27 = int_to_ptr.vmem [resolvable:$false] %s684_s27 }
  0x22   : > { %s686_s28 = scalar_lea.vmem %s685_s27, 2048  ;;  %p687_p10 = scmp.lt.s32.totalorder %s860_s6, %s685_s27 }
  0x23   : > { %p682_p1 = pnand %p680_p13, %p666_p0  ;;  %p688_p3 = scmp.lt.s32.totalorder %s686_s28, %s679_s22 }
  0x25   : > { %p683_p11 = pneg %p682_p1  ;;  %p689_p4 = por %p688_p3, %p687_p10 }
  0x27   : > { %p690_p5 = pnand %p689_p4, %p683_p11 }
  0x29   : > { %693 = shalt.err (!%p690_p5)
}
  0x2a   : > { %s763_s29 = smov 256   ;;  %s764_s30 = smov 16  }
  0x2b   : > { %615 = dma.hbm_to_vmem [thread:$0]  (!%p856_p12), %s852_s4, 1024, %s860_s6, %s862_s8, %s763_s29, %s763_s29, %s764_s30  }
  0x2c   : > { %p579_p0 = scmp.ge.s32.totalorder %s760_s15, 1  ;;  %p156_p2 = scmp.lt.s32.totalorder %s760_s15, 9 }
  0x2e   : > { %p157_p7 = pnand %p579_p0, %p156_p2 }
  0x2f   : > { %s893_s5 = sand.u32 (!%p157_p7), 1, %s752_s13  }
  0x30   : > { %160 = sbr.rel (%p157_p7) target bundleno = 817 (0x331), region = 32  ;;  %s580_s9 = sshll.u32 (!%p157_p7), %s893_s5, 6 }
  0x31   : > { %s163_s10 = scalar_lea.sflag (!%p157_p7), [#allocation3], %s893_s5  ;;  %s166_s11 = scalar_lea.vmem (!%p157_p7), [#allocation2], %s580_s9 }
  0x37   : > { %739 = dma.done.wait (%p833_p6), %s163_s10, 1024  }
  0x38   : > { %741 = vsyncadd (%p833_p6), %s163_s10, 4294966272  ;;  %v903_v0 = vld [vmem:[%s166_s11 + $0x20] sm:$0xff]  ;;  %v905_v1 = vld [vmem:[%s166_s11 + $0x28] sm:$0xff]  ;;  %v765_v16 = vmov 0.0   ;;  %vm284_vm0 = vcmask 261120   ;;  %vm766_vm1 = vmmov 0   ;;  %v229_v18 = vlaneseq }
  0x39   : > { %v907_v2 = vld [vmem:[%s166_s11] sm:$0xff]  ;;  %v203_v3 = vadd.f32 %v905_v1, %v903_v0  ;;  %v911_v4 = vld [vmem:[%s166_s11 + $0x8] sm:$0xff]  ;;  %v913_v5 = vld [vmem:[%s166_s11 + $0x30] sm:$0xff]  ;;  %v219_v15 = vmax.f32 %v903_v0, %v905_v1  ;;  %598 = vmatprep.subr.mxu0 %v765_v16  ;;  %603 = vmatprep.subr.mxu1 %v765_v16  ;;  %vm240_vm2 = vcmask 130112   ;;  %vm247_vm3 = vcmask 195712   ;;  %s188_s8 = scalar_lea.vmem [#allocation5], %s580_s9 }
  0x3a   : > { %v915_v6 = vld [vmem:[%s166_s11 + $0x38] sm:$0xff]  ;;  %v197_v7 = vadd.f32 %v911_v4, %v907_v2  ;;  %v919_v8 = vld [vmem:[%s166_s11 + $0x10] sm:$0xff]  ;;  %v213_v13 = vmax.f32 %v907_v2, %v911_v4  ;;  %v283_v17 = vld [vmem:[%s1005_s1] sm:$0x3]  ;;  %600 = vmatprep.mubr.msk.f32.mxu0 %vm766_vm1, %v765_v16  ;;  %605 = vmatprep.mubr.msk.f32.mxu1 %vm766_vm1, %v765_v16  ;;  %v230_v19 = vand.u32 127, %v229_v18  ;;  %v232_v22 = vshrl.u32 %v229_v18, 7 }
  0x3b   : > { %v921_v9 = vld [vmem:[%s166_s11 + $0x18] sm:$0xff]  ;;  %204 = vadd.xlane.f32.xlu1 %v203_v3  ;;  %v206_v10 = vadd.f32 %v915_v6, %v913_v5  ;;  %v222_v14 = vmax.f32 %v913_v5, %v915_v6  ;;  %599 = vmatpush3.xpose.msk.msra.mxu0 %vm284_vm0, %v283_v17  ;;  %vm254_vm4 = vcmask 261312   ;;  %vm281_vm5 = vcmask 1040384   ;;  %v362_v55 = vld [vmem:[%s1006_s2] sm:$0x3]  ;;  %s500_s17 = sshll.u32 %s188_s8, 4  ;;  %s954_s17 = int_to_ptr.vmem [resolvable:$true] %s500_s17 }
  0x3c   : > { %198 = vadd.xlane.f32.xlu0 %v197_v7  ;;  %v200_v11 = vadd.f32 %v921_v9, %v919_v8  ;;  %v216_v12 = vmax.f32 %v919_v8, %v921_v9  ;;  %v235_v21 = vadd.s32 4294967288, %v230_v19  ;;  %v242_v24 = vadd.s32 4294967280, %v230_v19  ;;  %s593_s19 = sshll.u32 %s811_s16, 10  ;;  %s487_s16 = scalar_lea.sflag [#allocation4], %s893_s5 }
  0x3d   : > { %v233_v27 = vsub.s32 %v230_v19, %v232_v22  ;;  %v249_v29 = vadd.s32 4294967272, %v230_v19  ;;  %vm367_vm6 = vcmask 1041408   ;;  %vm363_vm7 = vcmask 15360   ;;  %s959_s26 = scalar_lea.hbm %s1007_s3, %s593_s19  ;;  %s694_s27 = scalar_lea.vmem %s954_s17, 1024 }
  0x3e   : > { %v238_v26 = vsub.s32 %v235_v21, %v232_v22  ;;  %v245_v32 = vsub.s32 %v242_v24, %v232_v22  ;;  %604 = vmatpush3.msk.msra.mxu1 %vm367_vm6, %v362_v55  ;;  %p695_p6 = scmp.ne.s32.totalorder %s954_s17, %s694_s27  ;;  %p1014_p10 = scmp.ne.s32.totalorder %s1011_s24, 0 }
  0x3f   : > { %207 = vadd.xlane.f32.xlu1 %v206_v10  ;;  %v252_v37 = vsub.s32 %v249_v29, %v232_v22  ;;  %v453_v10 = vsub.s32 0, %v232_v22  ;;  %s767_s28 = smov [#allocation5]  }
  0x40   : > { %201 = vadd.xlane.f32.xlu0 %v200_v11  ;;  %p696_p11 = pnand %p695_p6, %p1014_p10  ;;  %s698_s29 = sshll.u32 %s767_s28, 4  ;;  %s699_s29 = int_to_ptr.vmem [resolvable:$false] %s698_s29 }
  0x41   : > { %s700_s30 = scalar_lea.vmem %s699_s29, 2048  ;;  %p701_p8 = scmp.lt.s32.totalorder %s954_s17, %s699_s29 }
  0x42   : > { %p697_p12 = pneg %p696_p11  ;;  %p702_p9 = scmp.lt.s32.totalorder %s700_s30, %s694_s27 }
  0x43   : > { %217 = vmax.xlane.f32.xlu1 %v216_v12 }
  0x44   : > { %214 = vmax.xlane.f32.xlu0 %v213_v13  ;;  %p703_p13 = por %p702_p9, %p701_p8 }
  0x46   : > { %p704_p1 = pnand %p703_p13, %p697_p12 }
  0x47   : > { %223 = vmax.xlane.f32.xlu1 %v222_v14 }
  0x48   : > { %220 = vmax.xlane.f32.xlu0 %v219_v15 }
  0xc8   : > { %v205_v20 = vpop.xlane.xlu1 %204 }
  0xc9   : > { %v199_v23 = vpop.xlane.xlu0 %198  ;;  %v211_v33 = vmul.f32 0.00390625, %v205_v20 }
  0xca   : > { %v209_v28 = vmul.f32 0.00390625, %v199_v23 }
  0xcb   : > { %v246_v43 = vrot.slane %v211_v33, %v245_v32 }
  0xcc   : > { %v208_v25 = vpop.xlane.xlu1 %207  ;;  %v234_v36 = vrot.slane %v209_v28, %v233_v27 }
  0xcd   : > { %v202_v30 = vpop.xlane.xlu0 %201  ;;  %v212_v38 = vmul.f32 0.00390625, %v208_v25 }
  0xce   : > { %v210_v31 = vmul.f32 0.00390625, %v202_v30 }
  0xcf   : > { %v253_v45 = vrot.slane %v212_v38, %v252_v37 }
  0xd0   : > { %v239_v34 = vrot.slane %v210_v31, %v238_v26  ;;  %v218_v35 = vpop.xlane.xlu1 %217 }
  0xd1   : > { %v215_v39 = vpop.xlane.xlu0 %214  ;;  %v268_v41 = vrot.slane %v218_v35, %v238_v26 }
  0xd2   : > { %v241_v40 = vsel %vm240_vm2, %v239_v34, %v234_v36  ;;  %v264_v42 = vrot.slane %v215_v39, %v233_v27 }
  0xd3   : > { %v248_v49 = vsel %vm247_vm3, %v246_v43, %v241_v40 }
  0xd4   : > { %v224_v44 = vpop.xlane.xlu1 %223  ;;  %v269_v50 = vsel %vm240_vm2, %v268_v41, %v264_v42  ;;  %v255_v53 = vsel %vm254_vm4, %v253_v45, %v248_v49 }
  0xd5   : > { %v221_v46 = vpop.xlane.xlu0 %220  ;;  %v278_v47 = vrot.slane %v224_v44, %v252_v37 }
  0xd6   : > { %v273_v48 = vrot.slane %v221_v46, %v245_v32 }
  0xd8   : > { %v274_v51 = vsel %vm247_vm3, %v273_v48, %v269_v50 }
  0xd9   : > { %v279_v52 = vsel %vm254_vm4, %v278_v47, %v274_v51 }
  0xda   : > { %v282_v54 = vsel %vm281_vm5, %v255_v53, %v279_v52 }
  0xdb   : > { %601 = vmatmul.mubr.msk.f32.vlgmr.msra.gmra.mrb[0].mxu0 %vm284_vm0, %v282_v54 }
 0x1ae   : > { %v357_v56 = vpop.f32.mrb[0].mxu0 }
 0x1af   : > { %v361_v57 = vmax.f32 %v357_v56, 0.0  ;;  %v602_v58 = vpop.f32.mrb[1].mxu0 }
 0x1b1   : > { %606 = vmatmul.mubr.msk.f32.vlgmr.msra.gmra.mrb[0].mxu1 %vm363_vm7, %v361_v57 }
 0x284   : > { %v437_v59 = vpop.f32.mrb[0].mxu1 }
 0x285   : > { %v442_v60 = vrot.slane %v437_v59, 1  ;;  %v607_v61 = vpop.f32.mrb[1].mxu1 }
 0x287   : > { %v444_v62 = vadd.f32 %v442_v60, %v437_v59 }
 0x289   : > { %v586_v63 = vmul.f32 -1.442695, %v444_v62 }
 0x28b   : > { %660 = vpow2.f32 %v586_v63 }
 0x295   : > { %v661_v3 = vpop.eup %660 }
 0x296   : > { %v448_v7 = vadd.f32 1.0, %v661_v3 }
 0x298   : > { %662 = vrcp.f32 %v448_v7 }
 0x2a2   : > { %v663_v11 = vpop.eup %662 }
 0x2a3   : > { %v454_v12 = vrot.slane %v663_v11, %v453_v10 }
 0x2a5   : > { %460 = vbcast.lane.b32.xlu1 %v454_v12, 264  ;;  %456 = vbcast.lane.b32.xlu0 %v454_v12, 256 }
 0x2a9   : > { %464 = vbcast.lane.b32.xlu1 %v454_v12, 272 }
 0x2ad   : > { %468 = vbcast.lane.b32.xlu1 %v454_v12, 280 }
 0x317   : > { %v461_v13 = vpop.permute.xlu1 %460  ;;  %v457_v14 = vpop.permute.xlu0 %456 }
 0x318   : > { %v472_v15 = vmul.f32 %v461_v13, %v919_v8  ;;  %v473_v16 = vmul.f32 %v461_v13, %v921_v9  ;;  %v470_v17 = vmul.f32 %v457_v14, %v907_v2  ;;  %v471_v18 = vmul.f32 %v457_v14, %v911_v4 }
 0x31a   : > { %480 = vst [vmem:[%s188_s8 + $0x10] sm:$0xff] %v472_v15  ;;  %481 = vst [vmem:[%s188_s8 + $0x18] sm:$0xff] %v473_v16 }
 0x31b   : > { %478 = vst [vmem:[%s188_s8] sm:$0xff] %v470_v17  ;;  %479 = vst [vmem:[%s188_s8 + $0x8] sm:$0xff] %v471_v18  ;;  %v465_v19 = vpop.permute.xlu1 %464 }
 0x31c   : > { %v474_v20 = vmul.f32 %v465_v19, %v903_v0  ;;  %v475_v8 = vmul.f32 %v465_v19, %v905_v1 }
 0x31e   : > { %482 = vst [vmem:[%s188_s8 + $0x20] sm:$0xff] %v474_v20  ;;  %483 = vst [vmem:[%s188_s8 + $0x28] sm:$0xff] %v475_v8 }
 0x31f   : > { %v469_v2 = vpop.permute.xlu1 %468 }
 0x320   : > { %v476_v4 = vmul.f32 %v469_v2, %v913_v5  ;;  %v477_v0 = vmul.f32 %v469_v2, %v915_v6 }
 0x322   : > { %484 = vst [vmem:[%s188_s8 + $0x30] sm:$0xff] %v476_v4  ;;  %485 = vst [vmem:[%s188_s8 + $0x38] sm:$0xff] %v477_v0 }
 0x323   : > { %707 = shalt.err (!%p704_p1)
}
 0x324   : > { %s708_s9 = scalar_lea.hbm %s959_s26, 1024  ;;  %s712_s23 = scalar_lea.hbm %s1007_s3, 8192 }
 0x325   : > { %p709_p3 = scmp.ne.s32.totalorder %s959_s26, %s708_s9  ;;  %p713_p0 = scmp.lt.u32.totalorder %s959_s26, %s1007_s3 }
 0x326   : > { %p714_p2 = scmp.lt.u32.totalorder %s712_s23, %s708_s9  ;;  %p716_p6 = scmp.lt.u32.totalorder %s708_s9, %s959_s26 }
 0x327   : > { %p710_p4 = pnand %p709_p3, %p1014_p10 }
 0x328   : > { %p715_p7 = por %p714_p2, %p713_p0 }
 0x329   : > { %p711_p5 = pneg %p710_p4 }
 0x32a   : > { %p717_p11 = por %p716_p6, %p715_p7 }
 0x32c   : > { %p718_p12 = pnand %p717_p11, %p711_p5 }
 0x32e   : > { %721 = shalt.err (!%p718_p12)
}
 0x32f   : > { %s768_s7 = smov 256   ;;  %s769_s8 = smov 16  }
 0x330   : > { %610 = dma.vmem_to_hbm [thread:$0]  (%p1014_p10), %s954_s17, 1024, %s959_s26, %s487_s16, %s768_s7, %s768_s7, %s769_s8  }
 0x331 PF: > { %p621_p8 = scmp.ge.s32.totalorder %s760_s15, 2  ;;  %s515_s19 = sand.u32 1, %s748_s12  }
 0x332   : > { %p1015_p9 = scmp.ne.s32.totalorder %s1012_s25, 0  ;;  %s516_s20 = scalar_lea.sflag [#allocation4], %s515_s19 }
 0x334   : > { %p617_p13 = pnand %p621_p8, %p1015_p9 }
 0x336   : > { %743 = dma.done.wait (!%p617_p13), %s516_s20, 1024  }
 0x337   : > { %745 = vsyncadd (!%p617_p13), %s516_s20, 4294966272  ;;  %p16_p1 = scmp.ge.s32.totalorder %s815_s18, 10   ;;  %s1016_s12 = smov %s752_s13 }
 0x338   : > { %s1017_s13 = smov %s756_s14  ;;  %s1018_s14 = smov %s827_s21 }
 0x339   : > { %s1019_s15 = smov %s815_s18  ;;  %18 = sbr.rel (!%p16_p1) target bundleno = 5 (0x5), region = 77 }
 0x340   :  { %521 = vsyncpa [#allocation3], 1 }
 0x341   :  { %523 = vsyncpa [#allocation3 + $0x1], 1 }
 0x342   :  { %524 = vsyncpa [#allocation4], 1 }
 0x343   :  { %526 = vsyncpa [#allocation4 + $0x1], 1 }

</bundles_post_ra>
